<compile_context>
chip_gen: v5e
topology: v5e:2x2
jax: 0.10.0
libtpu: 0.0.40
codegen_flags: <defaults>
</compile_context>

<pallas_src>
import math
import functools

import jax
import jax.numpy as jnp
from jax.experimental import pallas as pl
from jax.experimental.pallas import tpu as pltpu

# ---------------- model hyper-parameters (small, consistent with the module) ----
ATTENTION_HEADS = 4
D_MODEL = 32
LINEAR_UNITS = 64
BATCH = 2
SEQ = 8
LN_EPS = 1e-5


def _layernorm(x, gamma, beta, eps=LN_EPS):
    mu = jnp.mean(x, axis=-1, keepdims=True)
    xc = x - mu
    var = jnp.mean(xc * xc, axis=-1, keepdims=True)
    return xc * jax.lax.rsqrt(var + eps) * gamma + beta


def _layer_kernel(x_ref, m_ref, w_ref, qb_ref, w1_ref, w2_ref, vec_ref, o_ref,
                  *, num_heads, d_model, d_head, ffn_dim):
    H, D, DK, F = num_heads, d_model, d_head, ffn_dim

    x = x_ref[...].astype(jnp.float32)            # (T, D): rows of this batch element
    T = x.shape[0]
    xb = x.astype(jnp.bfloat16)                   # bf16 MXU operands, f32 accumulation

    vecs = vec_ref[...]                           # (8, 128) f32 packed small vectors
    b1 = vecs[0:1, 0:F]
    bo = vecs[1:2, 0:D]
    b2 = vecs[2:3, 0:D]
    g1 = vecs[3:4, 0:D]
    be1 = vecs[4:5, 0:D]
    g2 = vecs[5:6, 0:D]
    be2 = vecs[6:7, 0:D]

    m = m_ref[...]                                # (1, 2, T) f32: [additive bias; keep]
    bias = m[:, 0:1, :]                           # (1, 1, T): 0 = valid, -1e30 = masked
    keep = m[:, 1:2, :]                           # (1, 1, T): 1 = valid, 0 = masked

    w = w_ref[...]                                # (4H, DK, D) bf16
    wqkvT = w[0:3 * H]                            # (3H, DK, D): q/k/v weights, head-major, transposed
    wo3 = w[3 * H:4 * H]                          # (H, DK, D):  output projection, per head

    # --- QKV projection, batched over (kind, head): result is already head-major (G, T, DK),
    #     so no lane slices, concatenates or transposes are needed downstream. ---
    xg = jnp.broadcast_to(xb[None, :, :], (3 * H, T, D))
    qkv = jnp.einsum("gtd,gkd->gtk", xg, wqkvT,
                     preferred_element_type=jnp.float32) + qb_ref[...]   # (3H, T, DK) f32
    q = qkv[0:H]                                  # (H, T, DK)
    k = qkv[H:2 * H]
    v = qkv[2 * H:3 * H]

    # --- scaled dot-product attention, batched over heads (1/sqrt(dk) folded into wq/bq) ---
    s = jnp.einsum("hqd,hkd->hqk",
                   q.astype(jnp.bfloat16), k.astype(jnp.bfloat16),
                   preferred_element_type=jnp.float32)                   # (H, T, T)
    s = s + bias                                   # additive mask (one op, all heads)
    s = s - jnp.max(s, axis=-1, keepdims=True)
    e = jnp.exp(s)
    p = e * pl.reciprocal(jnp.sum(e, axis=-1, keepdims=True), approx=True)
    p = p * keep                                   # post-softmax zeroing (torch semantics)
    o = jnp.einsum("hqk,hkd->hqd",
                   p.astype(jnp.bfloat16), v.astype(jnp.bfloat16),
                   preferred_element_type=jnp.float32)                   # (H, T, DK)

    # Output projection folded per head + summed over heads: concat_h(o_h) @ Wo
    # == sum_h o_h @ Wo[h*dk:(h+1)*dk, :].  No head concat / relayout materialized.
    att = jnp.sum(jnp.einsum("htd,hdo->hto",
                             o.astype(jnp.bfloat16), wo3,
                             preferred_element_type=jnp.float32), axis=0) + bo   # (T, D)

    # --- residual + LayerNorm 1 ---
    x1 = _layernorm(x + att, g1, be1)

    # --- position-wise feed-forward ---
    h1 = jnp.maximum(
        jnp.dot(x1.astype(jnp.bfloat16), w1_ref[...],
                preferred_element_type=jnp.float32) + b1, 0.0)
    ff = jnp.dot(h1.astype(jnp.bfloat16), w2_ref[...],
                 preferred_element_type=jnp.float32) + b2

    # --- residual + LayerNorm 2 ---
    x2 = _layernorm(x1 + ff, g2, be2)
    o_ref[...] = x2.astype(o_ref.dtype)


def transformer_layer(x, mask, params, num_heads=ATTENTION_HEADS):
    """x: (B, T, D) f32, mask: (B, 1, T) f32 (1 = valid key). Returns (out, mask)."""
    B, T, D = x.shape
    F = params["w1"].shape[1]
    H = num_heads
    dk = D // H
    assert D % H == 0 and max(D, F) <= 128
    scale = 1.0 / math.sqrt(dk)

    def heads_T(w):                       # (D, H*dk) -> (H, dk, D)   (per-head W^T)
        return jnp.transpose(w.reshape(D, H, dk), (1, 2, 0))

    def heads_b(b):                       # (1, H*dk) -> (H, 1, dk)
        return jnp.transpose(b.reshape(1, H, dk), (1, 0, 2))

    # Packed weight slab: [Wq^T*scale | Wk^T | Wv^T | Wo] per head, bf16 for single-pass MXU.
    wstack = jnp.concatenate(
        [heads_T(params["wq"] * scale), heads_T(params["wk"]), heads_T(params["wv"]),
         params["wo"].reshape(H, dk, D)], axis=0).astype(jnp.bfloat16)        # (4H, dk, D)
    qkv_bias = jnp.concatenate(
        [heads_b(params["bq"] * scale), heads_b(params["bk"]), heads_b(params["bv"])],
        axis=0)                                                               # (3H, 1, dk) f32

    # All remaining (1, <=128) vectors packed into one (8, 128) f32 slab.
    def row(v):
        return jnp.pad(v, ((0, 0), (0, 128 - v.shape[1])))
    vecs = jnp.concatenate(
        [row(params["b1"]), row(params["bo"]), row(params["b2"]),
         row(params["g1"]), row(params["be1"]), row(params["g2"]), row(params["be2"]),
         jnp.zeros((1, 128), jnp.float32)], axis=0)                           # (8, 128)

    # Mask precomputed as additive bias (0 / -1e30) + multiplicative keep (1 / 0).
    maskpack = jnp.concatenate([(mask - 1.0) * 1e30, mask], axis=1)           # (B, 2, T) f32

    x2d = x.reshape(B * T, D)
    w1b = params["w1"].astype(jnp.bfloat16)
    w2b = params["w2"].astype(jnp.bfloat16)

    def replicated(a):
        nd = a.ndim
        return pl.BlockSpec(a.shape, lambda b: (0,) * nd)

    out2d = pl.pallas_call(
        functools.partial(_layer_kernel, num_heads=H, d_model=D, d_head=dk, ffn_dim=F),
        out_shape=jax.ShapeDtypeStruct((B * T, D), x.dtype),
        grid=(B,),
        in_specs=[
            pl.BlockSpec((T, D), lambda b: (b, 0)),         # x rows of batch element b
            pl.BlockSpec((1, 2, T), lambda b: (b, 0, 0)),   # mask bias/keep of batch b
            replicated(wstack),
            replicated(qkv_bias),
            replicated(w1b),
            replicated(w2b),
            replicated(vecs),
        ],
        out_specs=pl.BlockSpec((T, D), lambda b: (b, 0)),
        compiler_params=pltpu.CompilerParams(dimension_semantics=("parallel",)),
    )(x2d, maskpack, wstack, qkv_bias, w1b, w2b, vecs)

    return out2d.reshape(B, T, D), mask


def init_params(key, d_model=D_MODEL, linear_units=LINEAR_UNITS):
    ks = jax.random.split(key, 16)
    w = lambda k, shape: 0.05 * jax.random.normal(k, shape, jnp.float32)
    b = lambda k, shape: 0.02 * jax.random.normal(k, shape, jnp.float32)
    return {
        "wq": w(ks[0], (d_model, d_model)),
        "wk": w(ks[1], (d_model, d_model)),
        "wv": w(ks[2], (d_model, d_model)),
        "wo": w(ks[3], (d_model, d_model)),
        "w1": w(ks[4], (d_model, linear_units)),
        "w2": w(ks[5], (linear_units, d_model)),
        "bq": b(ks[6], (1, d_model)),
        "bk": b(ks[7], (1, d_model)),
        "bv": b(ks[8], (1, d_model)),
        "bo": b(ks[9], (1, d_model)),
        "b1": b(ks[10], (1, linear_units)),
        "b2": b(ks[11], (1, d_model)),
        "g1": 1.0 + 0.1 * jax.random.normal(ks[12], (1, d_model), jnp.float32),
        "be1": b(ks[13], (1, d_model)),
        "g2": 1.0 + 0.1 * jax.random.normal(ks[14], (1, d_model), jnp.float32),
        "be2": b(ks[15], (1, d_model)),
    }


def reference_layer(x, mask, p, num_heads=ATTENTION_HEADS):
    """Pure-JAX f32 reference mirroring the PyTorch forward (eval mode)."""
    B, T, D = x.shape
    dk = D // num_heads

    def proj(v, w, b):
        return v @ w + b

    q = proj(x, p["wq"], p["bq"]).reshape(B, T, num_heads, dk).transpose(0, 2, 1, 3)
    k = proj(x, p["wk"], p["bk"]).reshape(B, T, num_heads, dk).transpose(0, 2, 1, 3)
    v = proj(x, p["wv"], p["bv"]).reshape(B, T, num_heads, dk).transpose(0, 2, 1, 3)
    s = jnp.einsum("bhqd,bhkd->bhqk", q, k) / math.sqrt(dk)
    valid = (mask > 0)[:, None, :, :]                      # (B,1,1,T)
    s = jnp.where(valid, s, -1e30)
    pattn = jax.nn.softmax(s, axis=-1)
    pattn = jnp.where(valid, pattn, 0.0)
    att = jnp.einsum("bhqk,bhkd->bhqd", pattn, v).transpose(0, 2, 1, 3).reshape(B, T, D)
    att = att @ p["wo"] + p["bo"]

    def ln(y, g, b):
        mu = jnp.mean(y, -1, keepdims=True)
        var = jnp.mean((y - mu) ** 2, -1, keepdims=True)
        return (y - mu) / jnp.sqrt(var + LN_EPS) * g + b

    x1 = ln(x + att, p["g1"], p["be1"])
    ff = jnp.maximum(x1 @ p["w1"] + p["b1"], 0.0) @ p["w2"] + p["b2"]
    x2 = ln(x1 + ff, p["g2"], p["be2"])
    return x2, mask


if __name__ == "__main__":
    key = jax.random.PRNGKey(0)
    kx, kp = jax.random.split(key)

    x = jax.random.normal(kx, (BATCH, SEQ, D_MODEL), jnp.float32)
    # mask: first batch fully valid, second batch last 2 key positions masked out
    mask = jnp.ones((BATCH, 1, SEQ), jnp.float32)
    mask = mask.at[1, 0, SEQ - 2:].set(0.0)

    params = init_params(kp)

    out, out_mask = transformer_layer(x, mask, params)
    out = jax.block_until_ready(out)

    ref, _ = reference_layer(x, mask, params)
    assert out.shape == (BATCH, SEQ, D_MODEL)
    # Kernel intentionally uses bf16 MXU operands (per perf feedback); reference is pure f32.
    assert jnp.allclose(out, ref, atol=2e-2, rtol=2e-2), "mismatch vs JAX reference"

    print("KERNEL_OK")
</pallas_src>

<mosaic_0001>
module attributes {stable_mosaic.version = 11 : i64} {
  func.func @_layer_kernel(%arg0: i32, %arg1: memref<8x32xf32, #tpu.memory_space<vmem>>, %arg2: memref<1x2x8xf32, #tpu.memory_space<vmem>>, %arg3: memref<16x8x32xbf16, #tpu.memory_space<vmem>>, %arg4: memref<12x1x8xf32, #tpu.memory_space<vmem>>, %arg5: memref<32x64xbf16, #tpu.memory_space<vmem>>, %arg6: memref<64x32xbf16, #tpu.memory_space<vmem>>, %arg7: memref<8x128xf32, #tpu.memory_space<vmem>>, %arg8: memref<8x32xf32, #tpu.memory_space<vmem>>) attributes {dimension_semantics = [#tpu.dimension_semantics<parallel>], iteration_bounds = array<i64: 2>, scalar_prefetch = 0 : i64, scratch_operands = 0 : i64, tpu.core_type = #tpu.core_type<tc>, window_params = [{transform_indices = @transform_0, window_bounds = array<i64: 8, 32>}, {transform_indices = @transform_1, window_bounds = array<i64: 1, 2, 8>}, {pipeline_mode = #tpu.pipeline_mode<synchronous>, transform_indices = @transform_2, window_bounds = array<i64: 16, 8, 32>}, {pipeline_mode = #tpu.pipeline_mode<synchronous>, transform_indices = @transform_3, window_bounds = array<i64: 12, 1, 8>}, {pipeline_mode = #tpu.pipeline_mode<synchronous>, transform_indices = @transform_4, window_bounds = array<i64: 32, 64>}, {pipeline_mode = #tpu.pipeline_mode<synchronous>, transform_indices = @transform_5, window_bounds = array<i64: 64, 32>}, {pipeline_mode = #tpu.pipeline_mode<synchronous>, transform_indices = @transform_6, window_bounds = array<i64: 8, 128>}, {transform_indices = @transform_7, window_bounds = array<i64: 8, 32>}]} {
    %c0 = arith.constant 0 : index
    %c0_0 = arith.constant 0 : index
    %0 = vector.load %arg1[%c0, %c0_0] : memref<8x32xf32, #tpu.memory_space<vmem>>, vector<8x32xf32>
    %1 = arith.truncf %0 : vector<8x32xf32> to vector<8x32xbf16>
    %c0_1 = arith.constant 0 : index
    %c0_2 = arith.constant 0 : index
    %2 = vector.load %arg7[%c0_1, %c0_2] : memref<8x128xf32, #tpu.memory_space<vmem>>, vector<8x128xf32>
    %3 = vector.extract_strided_slice %2 {offsets = [0, 0], sizes = [1, 64], strides = [1, 1]} : vector<8x128xf32> to vector<1x64xf32>
    %4 = vector.extract_strided_slice %2 {offsets = [1, 0], sizes = [1, 32], strides = [1, 1]} : vector<8x128xf32> to vector<1x32xf32>
    %5 = vector.extract_strided_slice %2 {offsets = [2, 0], sizes = [1, 32], strides = [1, 1]} : vector<8x128xf32> to vector<1x32xf32>
    %6 = vector.extract_strided_slice %2 {offsets = [3, 0], sizes = [1, 32], strides = [1, 1]} : vector<8x128xf32> to vector<1x32xf32>
    %7 = vector.extract_strided_slice %2 {offsets = [4, 0], sizes = [1, 32], strides = [1, 1]} : vector<8x128xf32> to vector<1x32xf32>
    %8 = vector.extract_strided_slice %2 {offsets = [5, 0], sizes = [1, 32], strides = [1, 1]} : vector<8x128xf32> to vector<1x32xf32>
    %9 = vector.extract_strided_slice %2 {offsets = [6, 0], sizes = [1, 32], strides = [1, 1]} : vector<8x128xf32> to vector<1x32xf32>
    %c0_3 = arith.constant 0 : index
    %c0_4 = arith.constant 0 : index
    %c0_5 = arith.constant 0 : index
    %10 = vector.load %arg2[%c0_3, %c0_4, %c0_5] : memref<1x2x8xf32, #tpu.memory_space<vmem>>, vector<1x2x8xf32>
    %11 = vector.extract_strided_slice %10 {offsets = [0, 0, 0], sizes = [1, 1, 8], strides = [1, 1, 1]} : vector<1x2x8xf32> to vector<1x1x8xf32>
    %12 = vector.extract_strided_slice %10 {offsets = [0, 1, 0], sizes = [1, 1, 8], strides = [1, 1, 1]} : vector<1x2x8xf32> to vector<1x1x8xf32>
    %c0_6 = arith.constant 0 : index
    %c0_7 = arith.constant 0 : index
    %c0_8 = arith.constant 0 : index
    %13 = vector.load %arg3[%c0_6, %c0_7, %c0_8] : memref<16x8x32xbf16, #tpu.memory_space<vmem>>, vector<16x8x32xbf16>
    %14 = vector.extract_strided_slice %13 {offsets = [0, 0, 0], sizes = [12, 8, 32], strides = [1, 1, 1]} : vector<16x8x32xbf16> to vector<12x8x32xbf16>
    %15 = vector.extract_strided_slice %13 {offsets = [12, 0, 0], sizes = [4, 8, 32], strides = [1, 1, 1]} : vector<16x8x32xbf16> to vector<4x8x32xbf16>
    %16 = vector.shape_cast %1 : vector<8x32xbf16> to vector<1x8x32xbf16>
    %17 = vector.shape_cast %16 : vector<1x8x32xbf16> to vector<1x8x32xbf16>
    %18 = vector.broadcast %17 : vector<1x8x32xbf16> to vector<12x8x32xbf16>
    "tpu.trace_start"() <{level = 10 : i32, message = "gtd,gkd->gtk"}> : () -> ()
    %cst = arith.constant dense<0.000000e+00> : vector<12x8x8xf32>
    %19 = tpu.matmul %18, %14, %cst {dimension_numbers = #tpu.dot_dimension_numbers<[2], [2], [1], [1], [0, 0, 0, 1, 1, 1], [0], [0]>} : vector<12x8x32xbf16>, vector<12x8x32xbf16>, vector<12x8x8xf32> -> vector<12x8x8xf32>
    "tpu.trace_stop"() : () -> ()
    %c0_9 = arith.constant 0 : index
    %c0_10 = arith.constant 0 : index
    %c0_11 = arith.constant 0 : index
    %20 = vector.load %arg4[%c0_9, %c0_10, %c0_11] : memref<12x1x8xf32, #tpu.memory_space<vmem>>, vector<12x1x8xf32>
    %21 = vector.broadcast %20 : vector<12x1x8xf32> to vector<12x8x8xf32>
    %22 = arith.addf %19, %21 : vector<12x8x8xf32>
    %23 = vector.extract_strided_slice %22 {offsets = [0, 0, 0], sizes = [4, 8, 8], strides = [1, 1, 1]} : vector<12x8x8xf32> to vector<4x8x8xf32>
    %24 = vector.extract_strided_slice %22 {offsets = [4, 0, 0], sizes = [4, 8, 8], strides = [1, 1, 1]} : vector<12x8x8xf32> to vector<4x8x8xf32>
    %25 = vector.extract_strided_slice %22 {offsets = [8, 0, 0], sizes = [4, 8, 8], strides = [1, 1, 1]} : vector<12x8x8xf32> to vector<4x8x8xf32>
    %26 = arith.truncf %23 : vector<4x8x8xf32> to vector<4x8x8xbf16>
    %27 = arith.truncf %24 : vector<4x8x8xf32> to vector<4x8x8xbf16>
    "tpu.trace_start"() <{level = 10 : i32, message = "hqd,hkd->hqk"}> : () -> ()
    %cst_12 = arith.constant dense<0.000000e+00> : vector<4x8x8xf32>
    %28 = tpu.matmul %26, %27, %cst_12 {dimension_numbers = #tpu.dot_dimension_numbers<[2], [2], [1], [1], [0, 0, 0, 1, 1, 1], [0], [0]>} : vector<4x8x8xbf16>, vector<4x8x8xbf16>, vector<4x8x8xf32> -> vector<4x8x8xf32>
    "tpu.trace_stop"() : () -> ()
    %29 = vector.broadcast %11 : vector<1x1x8xf32> to vector<4x8x8xf32>
    %30 = arith.addf %28, %29 : vector<4x8x8xf32>
    %cst_13 = arith.constant dense<0xFF800000> : vector<4x8xf32>
    %31 = vector.multi_reduction <maximumf>, %30, %cst_13 [2] : vector<4x8x8xf32> to vector<4x8xf32>
    %32 = vector.shape_cast %31 : vector<4x8xf32> to vector<4x8x1xf32>
    %33 = vector.broadcast %32 : vector<4x8x1xf32> to vector<4x8x8xf32>
    %34 = arith.subf %30, %33 : vector<4x8x8xf32>
    %35 = math.exp %34 : vector<4x8x8xf32>
    %cst_14 = arith.constant dense<0.000000e+00> : vector<4x8xf32>
    %36 = vector.multi_reduction <add>, %35, %cst_14 [2] : vector<4x8x8xf32> to vector<4x8xf32>
    %37 = vector.shape_cast %36 : vector<4x8xf32> to vector<4x8x1xf32>
    %38 = tpu.reciprocal %37 {approx = true} : vector<4x8x1xf32> -> vector<4x8x1xf32>
    %39 = vector.broadcast %38 : vector<4x8x1xf32> to vector<4x8x8xf32>
    %40 = arith.mulf %35, %39 : vector<4x8x8xf32>
    %41 = vector.broadcast %12 : vector<1x1x8xf32> to vector<4x8x8xf32>
    %42 = arith.mulf %40, %41 : vector<4x8x8xf32>
    %43 = arith.truncf %42 : vector<4x8x8xf32> to vector<4x8x8xbf16>
    %44 = arith.truncf %25 : vector<4x8x8xf32> to vector<4x8x8xbf16>
    "tpu.trace_start"() <{level = 10 : i32, message = "hqk,hkd->hqd"}> : () -> ()
    %cst_15 = arith.constant dense<0.000000e+00> : vector<4x8x8xf32>
    %45 = tpu.matmul %43, %44, %cst_15 {dimension_numbers = #tpu.dot_dimension_numbers<[2], [1], [1], [2], [0, 0, 0, 1, 1, 2], [0], [0]>} : vector<4x8x8xbf16>, vector<4x8x8xbf16>, vector<4x8x8xf32> -> vector<4x8x8xf32>
    "tpu.trace_stop"() : () -> ()
    %46 = arith.truncf %45 : vector<4x8x8xf32> to vector<4x8x8xbf16>
    "tpu.trace_start"() <{level = 10 : i32, message = "htd,hdo->hto"}> : () -> ()
    %cst_16 = arith.constant dense<0.000000e+00> : vector<4x8x32xf32>
    %47 = tpu.matmul %46, %15, %cst_16 {dimension_numbers = #tpu.dot_dimension_numbers<[2], [1], [1], [2], [0, 0, 0, 1, 1, 2], [0], [0]>} : vector<4x8x8xbf16>, vector<4x8x32xbf16>, vector<4x8x32xf32> -> vector<4x8x32xf32>
    "tpu.trace_stop"() : () -> ()
    %cst_17 = arith.constant dense<0.000000e+00> : vector<8x32xf32>
    %48 = vector.multi_reduction <add>, %47, %cst_17 [0] : vector<4x8x32xf32> to vector<8x32xf32>
    %49 = vector.broadcast %4 : vector<1x32xf32> to vector<8x32xf32>
    %50 = arith.addf %48, %49 : vector<8x32xf32>
    %51 = arith.addf %0, %50 : vector<8x32xf32>
    %cst_18 = arith.constant dense<0.000000e+00> : vector<8xf32>
    %52 = vector.multi_reduction <add>, %51, %cst_18 [1] : vector<8x32xf32> to vector<8xf32>
    %53 = vector.shape_cast %52 : vector<8xf32> to vector<8x1xf32>
    %cst_19 = arith.constant 3.200000e+01 : f32
    %54 = vector.broadcast %cst_19 : f32 to vector<8x1xf32>
    %55 = arith.divf %53, %54 : vector<8x1xf32>
    %56 = vector.broadcast %55 : vector<8x1xf32> to vector<8x32xf32>
    %57 = arith.subf %51, %56 : vector<8x32xf32>
    %58 = arith.mulf %57, %57 : vector<8x32xf32>
    %cst_20 = arith.constant dense<0.000000e+00> : vector<8xf32>
    %59 = vector.multi_reduction <add>, %58, %cst_20 [1] : vector<8x32xf32> to vector<8xf32>
    %60 = vector.shape_cast %59 : vector<8xf32> to vector<8x1xf32>
    %cst_21 = arith.constant 3.200000e+01 : f32
    %61 = vector.broadcast %cst_21 : f32 to vector<8x1xf32>
    %62 = arith.divf %60, %61 : vector<8x1xf32>
    %cst_22 = arith.constant 9.99999974E-6 : f32
    %63 = vector.broadcast %cst_22 : f32 to vector<8x1xf32>
    %64 = arith.addf %62, %63 : vector<8x1xf32>
    %65 = math.rsqrt %64 : vector<8x1xf32>
    %66 = vector.broadcast %65 : vector<8x1xf32> to vector<8x32xf32>
    %67 = arith.mulf %57, %66 : vector<8x32xf32>
    %68 = vector.broadcast %6 : vector<1x32xf32> to vector<8x32xf32>
    %69 = arith.mulf %67, %68 : vector<8x32xf32>
    %70 = vector.broadcast %7 : vector<1x32xf32> to vector<8x32xf32>
    %71 = arith.addf %69, %70 : vector<8x32xf32>
    %72 = arith.truncf %71 : vector<8x32xf32> to vector<8x32xbf16>
    %c0_23 = arith.constant 0 : index
    %c0_24 = arith.constant 0 : index
    %73 = vector.load %arg5[%c0_23, %c0_24] : memref<32x64xbf16, #tpu.memory_space<vmem>>, vector<32x64xbf16>
    %cst_25 = arith.constant dense<0.000000e+00> : vector<8x64xf32>
    %74 = tpu.matmul %72, %73, %cst_25 {dimension_numbers = #tpu.dot_dimension_numbers<[1], [0], [0], [1], [0, 0, 1, 1], [], []>} : vector<8x32xbf16>, vector<32x64xbf16>, vector<8x64xf32> -> vector<8x64xf32>
    %75 = vector.broadcast %3 : vector<1x64xf32> to vector<8x64xf32>
    %76 = arith.addf %74, %75 : vector<8x64xf32>
    %cst_26 = arith.constant 0.000000e+00 : f32
    %77 = vector.broadcast %cst_26 : f32 to vector<8x64xf32>
    %78 = arith.maximumf %76, %77 : vector<8x64xf32>
    %79 = arith.truncf %78 : vector<8x64xf32> to vector<8x64xbf16>
    %c0_27 = arith.constant 0 : index
    %c0_28 = arith.constant 0 : index
    %80 = vector.load %arg6[%c0_27, %c0_28] : memref<64x32xbf16, #tpu.memory_space<vmem>>, vector<64x32xbf16>
    %cst_29 = arith.constant dense<0.000000e+00> : vector<8x32xf32>
    %81 = tpu.matmul %79, %80, %cst_29 {dimension_numbers = #tpu.dot_dimension_numbers<[1], [0], [0], [1], [0, 0, 1, 1], [], []>} : vector<8x64xbf16>, vector<64x32xbf16>, vector<8x32xf32> -> vector<8x32xf32>
    %82 = vector.broadcast %5 : vector<1x32xf32> to vector<8x32xf32>
    %83 = arith.addf %81, %82 : vector<8x32xf32>
    %84 = arith.addf %71, %83 : vector<8x32xf32>
    %cst_30 = arith.constant dense<0.000000e+00> : vector<8xf32>
    %85 = vector.multi_reduction <add>, %84, %cst_30 [1] : vector<8x32xf32> to vector<8xf32>
    %86 = vector.shape_cast %85 : vector<8xf32> to vector<8x1xf32>
    %cst_31 = arith.constant 3.200000e+01 : f32
    %87 = vector.broadcast %cst_31 : f32 to vector<8x1xf32>
    %88 = arith.divf %86, %87 : vector<8x1xf32>
    %89 = vector.broadcast %88 : vector<8x1xf32> to vector<8x32xf32>
    %90 = arith.subf %84, %89 : vector<8x32xf32>
    %91 = arith.mulf %90, %90 : vector<8x32xf32>
    %cst_32 = arith.constant dense<0.000000e+00> : vector<8xf32>
    %92 = vector.multi_reduction <add>, %91, %cst_32 [1] : vector<8x32xf32> to vector<8xf32>
    %93 = vector.shape_cast %92 : vector<8xf32> to vector<8x1xf32>
    %cst_33 = arith.constant 3.200000e+01 : f32
    %94 = vector.broadcast %cst_33 : f32 to vector<8x1xf32>
    %95 = arith.divf %93, %94 : vector<8x1xf32>
    %cst_34 = arith.constant 9.99999974E-6 : f32
    %96 = vector.broadcast %cst_34 : f32 to vector<8x1xf32>
    %97 = arith.addf %95, %96 : vector<8x1xf32>
    %98 = math.rsqrt %97 : vector<8x1xf32>
    %99 = vector.broadcast %98 : vector<8x1xf32> to vector<8x32xf32>
    %100 = arith.mulf %90, %99 : vector<8x32xf32>
    %101 = vector.broadcast %8 : vector<1x32xf32> to vector<8x32xf32>
    %102 = arith.mulf %100, %101 : vector<8x32xf32>
    %103 = vector.broadcast %9 : vector<1x32xf32> to vector<8x32xf32>
    %104 = arith.addf %102, %103 : vector<8x32xf32>
    %c0_35 = arith.constant 0 : index
    %c0_36 = arith.constant 0 : index
    %105 = vector.load %arg8[%c0_35, %c0_36] : memref<8x32xf32, #tpu.memory_space<vmem>>, vector<8x32xf32>
    tpu.vector_store %arg8[%c0_35, %c0_36], %104 {strides = array<i32>} : memref<8x32xf32, #tpu.memory_space<vmem>>, vector<8x32xf32>,
    return
  }
  func.func @transform_0(%arg0: i32) -> (i32, i32) {
    %c0_i32 = arith.constant 0 : i32
    %c0_i32_0 = arith.constant 0 : i32
    return %arg0, %c0_i32 : i32, i32
  }
  func.func @transform_1(%arg0: i32) -> (i32, i32, i32) {
    %c0_i32 = arith.constant 0 : i32
    %c0_i32_0 = arith.constant 0 : i32
    %c0_i32_1 = arith.constant 0 : i32
    return %arg0, %c0_i32, %c0_i32_0 : i32, i32, i32
  }
  func.func @transform_2(%arg0: i32) -> (i32, i32, i32) {
    %c0_i32 = arith.constant 0 : i32
    %c0_i32_0 = arith.constant 0 : i32
    %c0_i32_1 = arith.constant 0 : i32
    %c0_i32_2 = arith.constant 0 : i32
    return %c0_i32, %c0_i32_0, %c0_i32_1 : i32, i32, i32
  }
  func.func @transform_3(%arg0: i32) -> (i32, i32, i32) {
    %c0_i32 = arith.constant 0 : i32
    %c0_i32_0 = arith.constant 0 : i32
    %c0_i32_1 = arith.constant 0 : i32
    %c0_i32_2 = arith.constant 0 : i32
    return %c0_i32, %c0_i32_0, %c0_i32_1 : i32, i32, i32
  }
  func.func @transform_4(%arg0: i32) -> (i32, i32) {
    %c0_i32 = arith.constant 0 : i32
    %c0_i32_0 = arith.constant 0 : i32
    %c0_i32_1 = arith.constant 0 : i32
    return %c0_i32, %c0_i32_0 : i32, i32
  }
  func.func @transform_5(%arg0: i32) -> (i32, i32) {
    %c0_i32 = arith.constant 0 : i32
    %c0_i32_0 = arith.constant 0 : i32
    %c0_i32_1 = arith.constant 0 : i32
    return %c0_i32, %c0_i32_0 : i32, i32
  }
  func.func @transform_6(%arg0: i32) -> (i32, i32) {
    %c0_i32 = arith.constant 0 : i32
    %c0_i32_0 = arith.constant 0 : i32
    %c0_i32_1 = arith.constant 0 : i32
    return %c0_i32, %c0_i32_0 : i32, i32
  }
  func.func @transform_7(%arg0: i32) -> (i32, i32) {
    %c0_i32 = arith.constant 0 : i32
    %c0_i32_0 = arith.constant 0 : i32
    return %arg0, %c0_i32 : i32, i32
  }
}

</mosaic_0001>

<bundles_post_ra>
// kernel: tpu_custom_call.1
= control target key start
LH: loop header
LB: loop body
LE: loop exit
PB: predicated region body
PF: predicated region fallthrough
CT: control target
= control target key end

     0   :  { %12 = vsyncpa [#allocation3], 0  ;;  %s1666_s0 = inlined_call_operand.vmem [shape: f32[16,32], index: 0, kind: input, shape index: {}]   ;;  %s1667_s1 = inlined_call_operand.vmem [shape: f32[2,2,8], index: 1, kind: input, shape index: {}]   ;;  %s1668_s2 = inlined_call_operand.hbm [shape: bf16[16,8,32], index: 2, kind: input, shape index: {}]   ;;  %s1669_s3 = inlined_call_operand.vmem [shape: f32[12,1,8], index: 3, kind: input, shape index: {}]   ;;  %s1670_s4 = inlined_call_operand.vmem [shape: bf16[32,64], index: 4, kind: input, shape index: {}]   ;;  %s1671_s5 = inlined_call_operand.vmem [shape: bf16[64,32], index: 5, kind: input, shape index: {}]   ;;  %s1672_s6 = inlined_call_operand.vmem [shape: f32[8,128], index: 6, kind: input, shape index: {}]   ;;  %s1673_s7 = inlined_call_operand.hbm [shape: f32[16,32], index: 7, kind: output, shape index: {}]  }
   0x1   :  { %13 = vsyncpa [#allocation4], 0 }
   0x2   :  { %15 = vsyncpa [#allocation4 + $0x1], 0  ;;  %s1427_s24 = smov 0   ;;  %s1429_s25 = smov 0  }
   0x3   :  { %s1431_s26 = smov 0   ;;  %s1433_s27 = smov 0  }
   0x4 LB: > { %s1448_s28 = sadd.s32 4294967295, %s1381_s27   ;;  %s1129_s29 = sadd.s32 4294967294, %s1381_s27   ;;  %s1381_s27 = sphi %s1433_s27, %s1679_s27   ;;  %s1377_s26 = sphi %s1431_s26, %s1678_s26   ;;  %s1373_s25 = sphi %s1429_s25, %s1677_s25   ;;  %s1369_s24 = sphi %s1427_s24, %s1676_s24  }
   0x5   : > { %s1452_s30 = sadd.s32 1, %s1381_s27   ;;  %s185_s8 = sadd.s32 1, %s1377_s26 }
   0x6   : > { %s182_s9 = ssub.s32 %s1381_s27, %s1452_s30  ;;  %p195_p0 = scmp.ne.s32.totalorder %s1377_s26, %s1373_s25 }
   0x7   : > { %p183_p1 = scmp.eq.s32.totalorder %s182_s9, 0  ;;  %p196_p2 = scmp.eq.s32.totalorder %s1448_s28, 1 }
   0x8   : > { %p201_p3 = scmp.ne.s32.totalorder %s1373_s25, %s1369_s24  ;;  %p202_p4 = scmp.eq.s32.totalorder %s1129_s29, 1 }
   0x9   : > { %s1463_s10 = scalar_select %p183_p1, %s1377_s26, %s185_s8  }
   0xa   : > { %p1465_p5 = por %p196_p2, %p195_p0  ;;  %p1469_p6 = por %p202_p4, %p201_p3 }
   0xb   : > { %p1130_p7 = scmp.ge.s32.totalorder %s1381_s27, 1  ;;  %p209_p8 = scmp.lt.s32.totalorder %s1381_s27, 3 }
   0xc   : > { %p1212_p9 = scmp.eq.s32.totalorder %s1448_s28, 0  ;;  %s220_s15 = sshll.u32 %s1668_s2, 4  ;;  %s221_s15 = int_to_ptr.hbm [resolvable:$true] %s220_s15 }
   0xd   : > { %p210_p10 = pnand %p1130_p7, %p209_p8  ;;  %s1383_s16 = smov [#allocation2]  }
   0xe   : > { %s222_s17 = sshll.u32 %s1383_s16, 4  ;;  %s1384_s18 = smov 64   ;;  %s223_s17 = int_to_ptr.vmem [resolvable:$true] %s222_s17 }
   0xf   : > { %p1204_p11 = pneg %p210_p10  ;;  %s1385_s19 = smov 4  }
  0x10   : > { %264 = sbr.rel (%p210_p10) target bundleno = 1670 (0x686), region = 48 }
  0x11   : > { %p1205_p12 = pnand %p1212_p9, %p1204_p11 }
  0x13   : > { %1207 = dma.hbm_to_vmem [thread:$0]  (!%p1205_p12), %s221_s15, 1024, %s223_s17, [#allocation3], %s1384_s18, %s1384_s18, %s1385_s19  }
  0x15   : > { %1360 = dma.done.wait (%p1212_p9), [#allocation3], 1024  }
  0x16   : > { %1362 = vsyncadd (%p1212_p9), [#allocation3], 4294966272  ;;  %p300_p13 = scmp.lt.s32.totalorder %s1448_s28, 1  ;;  %vm377_vm0 = vcmask 261120   ;;  %v313_v0 = vld [vmem:[#allocation2] sm:$0xf] }
  0x17   : > { %v314_v1 = vld [vmem:[#allocation2 + $0x4] sm:$0xf]  ;;  %v315_v2 = vld [vmem:[#allocation2 + $0x8] sm:$0xf]  ;;  %v382_v3 = vsel %vm377_vm0, %v313_v0, 0  ;;  %vm582_vm1 = vcmask 64512  }
  0x18   : > { %s1487_s20 = scalar_select %p300_p13, %s1448_s28, 1  ;;  %v398_v4 = vsel %vm377_vm0, %v314_v1, 0  ;;  %v414_v5 = vsel %vm377_vm0, %v315_v2, 0  ;;  %v316_v6 = vld [vmem:[#allocation2 + $0xc] sm:$0xf]  ;;  %391 = vmatpush.bf16.xpose.msra.mxu0 %v382_v3  ;;  %vm719_vm2 = vcmask 1043456  }
  0x19   : > { %407 = vmatpush.bf16.xpose.msra.mxu1 %v398_v4  ;;  %v430_v7 = vsel %vm377_vm0, %v316_v6, 0  ;;  %v317_v9 = vld [vmem:[#allocation2 + $0x10] sm:$0xf]  ;;  %v318_v10 = vld [vmem:[#allocation2 + $0x14] sm:$0xf]  ;;  %423 = vmatpush.bf16.xpose.msra.mxu2 %v414_v5  ;;  %vm985_vm7 = vcmask 523264  }
  0x1a   : > { %s1136_s21 = sshll.u32 %s1487_s20, 3  ;;  %439 = vmatpush.bf16.xpose.msra.mxu3 %v430_v7  ;;  %v446_v11 = vsel %vm377_vm0, %v317_v9, 0  ;;  %v462_v12 = vsel %vm377_vm0, %v318_v10, 0  ;;  %v319_v13 = vld [vmem:[#allocation2 + $0x18] sm:$0xf]  ;;  %s1137_s23 = sshll.u32 %s1487_s20, 1 }
  0x1b   : > { %s303_s29 = scalar_lea.vmem %s1666_s0, %s1136_s21  ;;  %v320_v14 = vld [vmem:[#allocation2 + $0x1c] sm:$0xf]  ;;  %v478_v15 = vsel %vm377_vm0, %v319_v13, 0  ;;  %v323_v18 = vld [vmem:[#allocation2 + $0x28] sm:$0xf]  ;;  %s307_s9 = scalar_lea.vmem %s1667_s1, %s1137_s23 }
  0x1c   : > { %v1497_v8 = vld [vmem:[%s303_s29] sm:$0xff]  ;;  %v494_v16 = vsel %vm377_vm0, %v320_v14, 0  ;;  %v542_v19 = vsel %vm377_vm0, %v323_v18, 0  ;;  %v324_v24 = vld [vmem:[#allocation2 + $0x2c] sm:$0xf]  ;;  %s297_s20 = sand.u32 1, %s1373_s25  }
  0x1d   : > { %v310_v17 = vpack.c.bf16 %v1497_v8, %v1497_v8  ;;  %v321_v20 = vld [vmem:[#allocation2 + $0x20] sm:$0xf]  ;;  %v322_v21 = vld [vmem:[#allocation2 + $0x24] sm:$0xf]  ;;  %v558_v25 = vsel %vm377_vm0, %v324_v24, 0  ;;  %s1135_s13 = sshll.u32 %s297_s20, 3 }
  0x1e   : > { %v510_v22 = vsel %vm377_vm0, %v321_v20, 0  ;;  %v526_v23 = vsel %vm377_vm0, %v322_v21, 0  ;;  %v1255_v32 = vld [vmem:[%s1669_s3 + $0x4] ss:$0 sm:$0xff]  ;;  %v1256_v33 = vld [vmem:[%s1669_s3 + $0x5] ss:$0 sm:$0xff] }
  0x1f   : > { %1138 = vmatmul.msk.bf16.vlgmr.msra.gmra.mxu0 %vm377_vm0, %v310_v17  ;;  %v1252_v40 = vld [vmem:[%s1669_s3 + $0x1] ss:$0 sm:$0xff]  ;;  %v1251_v43 = vld [vmem:[%s1669_s3] ss:$0 sm:$0xff]  ;;  %v1257_v44 = vld [vmem:[%s1669_s3 + $0x6] ss:$0 sm:$0xff] }
  0x20   : > { %455 = vmatpush.bf16.xpose.msrb.mxu0 %v446_v11  ;;  %1139 = vmatmul.msk.bf16.vlgmr.msra.gmra.mxu1 %vm377_vm0, %v310_v17  ;;  %v1258_v45 = vld [vmem:[%s1669_s3 + $0x7] ss:$0 sm:$0xff]  ;;  %v1253_v57 = vld [vmem:[%s1669_s3 + $0x2] ss:$0 sm:$0xff]  ;;  %v1254_v58 = vld [vmem:[%s1669_s3 + $0x3] ss:$0 sm:$0xff] }
  0x21   : > { %471 = vmatpush.bf16.xpose.msrb.mxu1 %v462_v12  ;;  %487 = vmatpush.bf16.xpose.msrb.mxu2 %v478_v15  ;;  %v1259_v6 = vld [vmem:[%s1669_s3 + $0x8] ss:$0 sm:$0xff]  ;;  %v1260_v7 = vld [vmem:[%s1669_s3 + $0x9] ss:$0 sm:$0xff]  ;;  %v1261_v13 = vld [vmem:[%s1669_s3 + $0xa] ss:$0 sm:$0xff] }
  0x22   : > { %503 = vmatpush.bf16.xpose.msrb.mxu3 %v494_v16  ;;  %1140 = vmatmul.msk.bf16.vlgmr.msra.gmra.mxu2 %vm377_vm0, %v310_v17  ;;  %s1189_s14 = sshll.u32 %s1448_s28, 3  ;;  %s299_s18 = scalar_lea.vmem [#allocation5], %s1135_s13 }
  0x23   : > { %1141 = vmatmul.msk.bf16.vlgmr.msra.gmra.mxu3 %vm377_vm0, %v310_v17  ;;  %s1041_s17 = scalar_lea.hbm %s1673_s7, %s1189_s14  ;;  %s1043_s19 = sshll.u32 %s299_s18, 4  ;;  %s1044_s19 = int_to_ptr.vmem [resolvable:$true] %s1043_s19 }
  0x24   : > { %s1045_s21 = sshll.u32 %s1041_s17, 4  ;;  %s1031_s28 = scalar_lea.sflag [#allocation4], %s297_s20  ;;  %s1046_s21 = int_to_ptr.hbm [resolvable:$true] %s1045_s21 }
  0x25   : > { %s1329_s22 = sshra.s32 %s1046_s21, 4  ;;  %s1330_s22 = int_to_ptr.hbm [resolvable:$true] %s1329_s22 }
  0x26   : > { %s1331_s23 = scalar_lea.hbm %s1330_s22, 8  ;;  %p1336_p3 = scmp.lt.s32.totalorder %s1330_s22, %s1673_s7 }
  0x27   : > { %p1332_p0 = scmp.ne.s32.totalorder %s1330_s22, %s1331_s23 }
  0x28   : > { %519 = vmatpush.bf16.xpose.msra.mxu0 %v510_v22 }
  0x29   : > { %551 = vmatpush.bf16.xpose.msra.mxu2 %v542_v19  ;;  %535 = vmatpush.bf16.xpose.msra.mxu1 %v526_v23  ;;  %v1262_v23 = vld [vmem:[%s1669_s3 + $0xb] ss:$0 sm:$0xff]  ;;  %p1333_p1 = pnand %p1332_p0, %p1465_p5 }
  0x2a   : > { %567 = vmatpush.bf16.xpose.msra.mxu3 %v558_v25 }
  0x2b   : > { %p1334_p2 = pneg %p1333_p1 }
  0x2f   : > { %1142 = vmatmul.msk.bf16.vlgmr.msrb.gmra.mxu0 %vm377_vm0, %v310_v17 }
  0x30   : > { %1143 = vmatmul.msk.bf16.vlgmr.msrb.gmra.mxu1 %vm377_vm0, %v310_v17 }
  0x32   : > { %1144 = vmatmul.msk.bf16.vlgmr.msrb.gmra.mxu2 %vm377_vm0, %v310_v17 }
  0x33   : > { %1145 = vmatmul.msk.bf16.vlgmr.msrb.gmra.mxu3 %vm377_vm0, %v310_v17 }
  0x3f   : > { %1146 = vmatmul.msk.bf16.vlgmr.msra.gmra.mxu0 %vm377_vm0, %v310_v17 }
  0x40   : > { %1147 = vmatmul.msk.bf16.vlgmr.msra.gmra.mxu1 %vm377_vm0, %v310_v17 }
  0x42   : > { %1148 = vmatmul.msk.bf16.vlgmr.msra.gmra.mxu2 %vm377_vm0, %v310_v17 }
  0x43   : > { %1149 = vmatmul.msk.bf16.vlgmr.msra.gmra.mxu3 %vm377_vm0, %v310_v17 }
  0x9c   : > { %v393_v26 = vpop.f32.mrf.mxu0 }
  0x9d   : > { %v409_v27 = vpop.f32.mrf.mxu1  ;;  %v394_v51 = vadd.f32 %v1251_v43, %v393_v26 }
  0x9e   : > { %v410_v48 = vadd.f32 %v1252_v40, %v409_v27 }
  0x9f   : > { %v573_v61 = vpack.c.bf16 %v394_v51, %v394_v51 }
  0xa0   : > { %v574_v56 = vpack.c.bf16 %v410_v48, %v410_v48 }
  0xa4   : > { %v395_v30 = vpop.f32.mrf.mxu0 }
  0xa5   : > { %v425_v28 = vpop.f32.mrf.mxu2  ;;  %v411_v31 = vpop.f32.mrf.mxu1 }
  0xa6   : > { %v441_v29 = vpop.f32.mrf.mxu3  ;;  %v426_v0 = vadd.f32 %v1253_v57, %v425_v28  ;;  %v312_v31 = vld [vmem:[%s307_s9] sm:$0x3]  ;;  %s1335_s9 = scalar_lea.hbm %s1673_s7, 16 }
  0xa7   : > { %v442_v1 = vadd.f32 %v1254_v58, %v441_v29  ;;  %p1337_p4 = scmp.lt.s32.totalorder %s1335_s9, %s1331_s23 }
  0xa8   : > { %v575_v4 = vpack.c.bf16 %v426_v0, %v426_v0 }
  0xa9   : > { %v576_v5 = vpack.c.bf16 %v442_v1, %v442_v1  ;;  %p1338_p7 = por %p1337_p4, %p1336_p3 }
  0xab   : > { %p1339_p8 = pnand %p1338_p7, %p1334_p2 }
  0xac   : > { %v457_v36 = vpop.f32.mrf.mxu0 }
  0xad   : > { %v427_v34 = vpop.f32.mrf.mxu2  ;;  %v473_v37 = vpop.f32.mrf.mxu1  ;;  %v458_v38 = vadd.f32 %v1255_v32, %v457_v36  ;;  %v581_v32 = vperm.slane %v312_v31, 0 }
  0xae   : > { %v443_v35 = vpop.f32.mrf.mxu3  ;;  %v474_v39 = vadd.f32 %v1256_v33, %v473_v37 }
  0xaf   : > { %v577_v41 = vpack.c.bf16 %v458_v38, %v458_v38 }
  0xb0   : > { %v578_v42 = vpack.c.bf16 %v474_v39, %v474_v39 }
  0xb1   : > { %v587_v46 = vsel %vm582_vm1, %v577_v41, 0 }
  0xb2   : > { %v606_v47 = vsel %vm582_vm1, %v578_v42, 0  ;;  %596 = vmatpush.bf16.xpose.msrb.mxu0 %v587_v46 }
  0xb3   : > { %615 = vmatpush.bf16.xpose.msrb.mxu1 %v606_v47 }
  0xb4   : > { %v459_v54 = vpop.f32.mrf.mxu0 }
  0xb5   : > { %v489_v49 = vpop.f32.mrf.mxu2  ;;  %v475_v55 = vpop.f32.mrf.mxu1 }
  0xb6   : > { %v505_v50 = vpop.f32.mrf.mxu3  ;;  %v490_v52 = vadd.f32 %v1257_v44, %v489_v49 }
  0xb7   : > { %v506_v53 = vadd.f32 %v1258_v45, %v505_v50 }
  0xb8   : > { %v579_v59 = vpack.c.bf16 %v490_v52, %v490_v52 }
  0xb9   : > { %v580_v60 = vpack.c.bf16 %v506_v53, %v506_v53  ;;  %1150 = vmatmul.msk.bf16.vlgmr.msrb.gmra.mxu0 %vm582_vm1, %v573_v61 }
  0xba   : > { %v625_v62 = vsel %vm582_vm1, %v579_v59, 0  ;;  %1151 = vmatmul.msk.bf16.vlgmr.msrb.gmra.mxu1 %vm582_vm1, %v574_v56 }
  0xbb   : > { %v644_v63 = vsel %vm582_vm1, %v580_v60, 0  ;;  %634 = vmatpush.bf16.xpose.msrb.mxu2 %v625_v62 }
  0xbc   : > { %653 = vmatpush.bf16.xpose.msrb.mxu3 %v644_v63  ;;  %v521_v9 = vpop.f32.mrf.mxu0 }
  0xbd   : > { %v491_v2 = vpop.f32.mrf.mxu2  ;;  %v537_v10 = vpop.f32.mrf.mxu1  ;;  %v522_v11 = vadd.f32 %v1259_v6, %v521_v9  ;;  %v703_v6 = vperm.slane %v312_v31, 1  ;;  %v327_v31 = vld [vmem:[#allocation2 + $0x38] sm:$0xf] }
  0xbe   : > { %v507_v3 = vpop.f32.mrf.mxu3  ;;  %v538_v12 = vadd.f32 %v1260_v7, %v537_v10 }
  0xbf   : > { %v712_v14 = vpack.c.bf16 %v522_v11, %v522_v11 }
  0xc0   : > { %v713_v15 = vpack.c.bf16 %v538_v12, %v538_v12 }
  0xc1   : > { %v721_v17 = vsel %vm719_vm2, %v712_v14, 0 }
  0xc2   : > { %1152 = vmatmul.msk.bf16.vlgmr.msrb.gmra.mxu2 %vm582_vm1, %v575_v4  ;;  %v740_v18 = vsel %vm719_vm2, %v713_v15, 0  ;;  %730 = vmatpush.bf16.msra.mxu0 %v721_v17 }
  0xc3   : > { %1153 = vmatmul.msk.bf16.vlgmr.msrb.gmra.mxu3 %vm582_vm1, %v576_v5  ;;  %749 = vmatpush.bf16.msra.mxu1 %v740_v18 }
  0xc4   : > { %v523_v21 = vpop.f32.mrf.mxu0 }
  0xc5   : > { %v553_v16 = vpop.f32.mrf.mxu2  ;;  %v539_v22 = vpop.f32.mrf.mxu1 }
  0xc6   : > { %v554_v19 = vadd.f32 %v1261_v13, %v553_v16  ;;  %v569_v25 = vpop.f32.mrf.mxu3 }
  0xc7   : > { %v570_v26 = vadd.f32 %v1262_v23, %v569_v25 }
  0xc8   : > { %v714_v20 = vpack.c.bf16 %v554_v19, %v554_v19 }
  0xc9   : > { %v715_v28 = vpack.c.bf16 %v570_v26, %v570_v26 }
  0xca   : > { %v759_v24 = vsel %vm719_vm2, %v714_v20, 0 }
  0xcb   : > { %768 = vmatpush.bf16.msra.mxu2 %v759_v24  ;;  %v778_v29 = vsel %vm719_vm2, %v715_v28, 0 }
  0xcc   : > { %787 = vmatpush.bf16.msra.mxu3 %v778_v29  ;;  %v326_v29 = vld [vmem:[#allocation2 + $0x34] sm:$0xf] }
  0xcd   : > { %v555_v27 = vpop.f32.mrf.mxu2 }
  0xce   : > { %v571_v30 = vpop.f32.mrf.mxu3  ;;  %v325_v27 = vld [vmem:[#allocation2 + $0x30] sm:$0xf] }
  0xcf   : > { %v801_v28 = vsel %vm719_vm2, %v325_v27, 0  ;;  %v820_v30 = vsel %vm719_vm2, %v326_v29, 0 }
  0xd0   : > { %810 = vmatpush.bf16.msrb.mxu0 %v801_v28  ;;  %829 = vmatpush.bf16.msrb.mxu1 %v820_v30 }
 0x136   : > { %v598_v33 = vpop.f32.mrf.mxu0 }
 0x137   : > { %v617_v34 = vpop.f32.mrf.mxu1  ;;  %v599_v35 = vadd.f32 %v598_v33, %v581_v32  ;;  %v328_v33 = vld [vmem:[#allocation2 + $0x3c] sm:$0xf] }
 0x138   : > { %v618_v37 = vadd.f32 %v617_v34, %v581_v32  ;;  %v858_v34 = vsel %vm719_vm2, %v328_v33, 0 }
 0x139   : > { %v659_v36 = vsel %vm582_vm1, %v599_v35, -inf  ;;  %867 = vmatpush.bf16.msrb.mxu3 %v858_v34 }
 0x13a   : > { %660 = vmax.xlane.f32.xlu1 %v659_v36  ;;  %v662_v40 = vsel %vm582_vm1, %v618_v37, -inf }
 0x13e   : > { %v600_v38 = vpop.f32.mrf.mxu0 }
 0x13f   : > { %v619_v39 = vpop.f32.mrf.mxu1 }
 0x142   : > { %663 = vmax.xlane.f32.xlu1 %v662_v40 }
 0x145   : > { %v636_v41 = vpop.f32.mrf.mxu2 }
 0x146   : > { %v655_v42 = vpop.f32.mrf.mxu3  ;;  %v637_v43 = vadd.f32 %v636_v41, %v581_v32 }
 0x147   : > { %v656_v45 = vadd.f32 %v655_v42, %v581_v32  ;;  %v839_v32 = vsel %vm719_vm2, %v327_v31, 0 }
 0x148   : > { %v665_v44 = vsel %vm582_vm1, %v637_v43, -inf  ;;  %848 = vmatpush.bf16.msrb.mxu2 %v839_v32 }
 0x149   : > { %666 = vmax.xlane.f32.xlu0 %v665_v44  ;;  %v668_v48 = vsel %vm582_vm1, %v656_v45, -inf }
 0x14d   : > { %v638_v46 = vpop.f32.mrf.mxu2 }
 0x14e   : > { %v657_v47 = vpop.f32.mrf.mxu3 }
 0x151   : > { %669 = vmax.xlane.f32.xlu0 %v668_v48 }
 0x1ad   : > { %v661_v49 = vpop.xlane.xlu1 %660 }
 0x1ae   : > { %v671_v50 = vsub.f32 %v599_v35, %v661_v49 }
 0x1b0   : > { %v675_v51 = vmul.f32 1.442695, %v671_v50 }
 0x1b2   : > { %1263 = vpow2.f32 %v675_v51 }
 0x1b5   : > { %v664_v52 = vpop.xlane.xlu1 %663 }
 0x1b6   : > { %v672_v53 = vsub.f32 %v618_v37, %v664_v52 }
 0x1b8   : > { %v1264_v54 = vpop.eup %1263  ;;  %v677_v55 = vmul.f32 1.442695, %v672_v53 }
 0x1b9   : > { %v683_v57 = vsel %vm582_vm1, %v1264_v54, 0.0 }
 0x1ba   : > { %1265 = vpow2.f32 %v677_v55  ;;  %684 = vadd.xlane.f32.xlu0 %v683_v57  ;;  %v1599_v55 = vld [vmem:[%s1672_s6] sm:$0xff] }
 0x1bb   : > { %v912_v28 = vperm.slane %v1599_v55, 3  ;;  %v914_v30 = vperm.slane %v1599_v55, 4 }
 0x1bc   : > { %v667_v56 = vpop.xlane.xlu0 %666 }
 0x1bd   : > { %v673_v58 = vsub.f32 %v637_v43, %v667_v56 }
 0x1bf   : > { %v679_v59 = vmul.f32 1.442695, %v673_v58 }
 0x1c0   : > { %v1266_v60 = vpop.eup %1265 }
 0x1c1   : > { %1267 = vpow2.f32 %v679_v59  ;;  %v686_v62 = vsel %vm582_vm1, %v1266_v60, 0.0 }
 0x1c2   : > { %687 = vadd.xlane.f32.xlu1 %v686_v62 }
 0x1c4   : > { %v670_v61 = vpop.xlane.xlu0 %669 }
 0x1c5   : > { %v674_v63 = vsub.f32 %v656_v45, %v670_v61 }
 0x1c7   : > { %v1268_v0 = vpop.eup %1267  ;;  %v681_v1 = vmul.f32 1.442695, %v674_v63 }
 0x1c8   : > { %v689_v2 = vsel %vm582_vm1, %v1268_v0, 0.0 }
 0x1c9   : > { %1269 = vpow2.f32 %v681_v1  ;;  %690 = vadd.xlane.f32.xlu2 %v689_v2 }
 0x1cf   : > { %v1270_v3 = vpop.eup %1269 }
 0x1d0   : > { %v692_v4 = vsel %vm582_vm1, %v1270_v3, 0.0 }
 0x1d1   : > { %693 = vadd.xlane.f32.xlu2 %v692_v4 }
 0x22d   : > { %v685_v5 = vpop.xlane.xlu0 %684 }
 0x22e   : > { %1271 = vrcp.f32 %v685_v5 }
 0x234   : > { %v1272_v7 = vpop.eup %1271 }
 0x235   : > { %v699_v9 = vmul.f32 %v1272_v7, %v1264_v54  ;;  %v688_v10 = vpop.xlane.xlu1 %687 }
 0x236   : > { %1273 = vrcp.f32 %v688_v10 }
 0x237   : > { %v704_v11 = vmul.f32 %v703_v6, %v699_v9 }
 0x239   : > { %v708_v12 = vpack.c.bf16 %v704_v11, %v704_v11 }
 0x23b   : > { %1154 = vmatmul.msk.bf16.vlgmr.msra.gmra.mxu0 %vm582_vm1, %v708_v12 }
 0x23c   : > { %v691_v13 = vpop.xlane.xlu2 %690  ;;  %v1274_v14 = vpop.eup %1273 }
 0x23d   : > { %1275 = vrcp.f32 %v691_v13  ;;  %v700_v15 = vmul.f32 %v1274_v14, %v1266_v60  ;;  %v880_v60 = vperm.slane %v1599_v55, 1 }
 0x23f   : > { %v705_v16 = vmul.f32 %v703_v6, %v700_v15 }
 0x241   : > { %v709_v18 = vpack.c.bf16 %v705_v16, %v705_v16  ;;  %v1192_v16 = vld [vmem:[%s1670_s4] sm:$0xff] }
 0x243   : > { %v1276_v17 = vpop.eup %1275  ;;  %1155 = vmatmul.msk.bf16.vlgmr.msra.gmra.mxu1 %vm582_vm1, %v709_v18 }
 0x244   : > { %v701_v19 = vmul.f32 %v1276_v17, %v1268_v0  ;;  %v694_v20 = vpop.xlane.xlu2 %693  ;;  %v1197_v17 = vld [vmem:[%s1671_s5 + $0x18] sm:$0xff] }
 0x245   : > { %1277 = vrcp.f32 %v694_v20  ;;  %993 = vmatpush.bf16.msra.mxu1 %v1197_v17  ;;  %v1196_v20 = vld [vmem:[%s1671_s5 + $0x10] sm:$0xff] }
 0x246   : > { %v706_v21 = vmul.f32 %v703_v6, %v701_v19 }
 0x248   : > { %v710_v22 = vpack.c.bf16 %v706_v21, %v706_v21 }
 0x249   : > { %994 = vmatpush.bf16.msra.mxu1 %v1196_v20 }
 0x24a   : > { %1156 = vmatmul.msk.bf16.vlgmr.msra.gmra.mxu2 %vm582_vm1, %v710_v22 }
 0x24b   : > { %v1278_v23 = vpop.eup %1277 }
 0x24c   : > { %v702_v24 = vmul.f32 %v1278_v23, %v1270_v3  ;;  %v1386_v3 = vmov 32.0  }
 0x24d   : > { %1279 = vrcp.f32 %v1386_v3  ;;  %v1027_v3 = vperm.slane %v1599_v55, 6 }
 0x24e   : > { %v707_v25 = vmul.f32 %v703_v6, %v702_v24 }
 0x250   : > { %v711_v26 = vpack.c.bf16 %v707_v25, %v707_v25 }
 0x252   : > { %1157 = vmatmul.msk.bf16.vlgmr.msra.gmra.mxu3 %vm582_vm1, %v711_v26 }
 0x253   : > { %v1280_v4 = vpop.eup %1279 }
 0x254   : > { %v887_v5 = vmul.f32 32.0, %v1280_v4  ;;  %vm891_vm3 = vweird.f32 %v1280_v4 }
 0x256   : > { %v888_v6 = vsub.f32 1.0, %v887_v5 }
 0x258   : > { %v889_v7 = vmul.f32 %v1280_v4, %v888_v6 }
 0x25a   : > { %v890_v9 = vadd.f32 %v1280_v4, %v889_v7 }
 0x25c   : > { %v892_v10 = vsel %vm891_vm3, %v1280_v4, %v890_v9 }
 0x2b8   : > { %v732_v35 = vpop.f32.mrf.mxu0 }
 0x2b9   : > { %v793_v36 = vpack.c.bf16 %v732_v35, %v732_v35  ;;  %v1195_v35 = vld [vmem:[%s1671_s5 + $0x8] sm:$0xff] }
 0x2ba   : > { %995 = vmatpush.bf16.msra.mxu1 %v1195_v35 }
 0x2bb   : > { %1158 = vmatmul.msk.bf16.vlgmr.msrb.gmra.mxu0 %vm582_vm1, %v793_v36  ;;  %v1194_v36 = vld [vmem:[%s1671_s5] sm:$0xff] }
 0x2be   : > { %996 = vmatpush.bf16.msra.mxu1 %v1194_v36 }
 0x2c0   : > { %v734_v37 = vpop.f32.mrf.mxu0  ;;  %v751_v38 = vpop.f32.mrf.mxu1 }
 0x2c1   : > { %v794_v39 = vpack.c.bf16 %v751_v38, %v751_v38  ;;  %v921_v37 = vperm.slane %v1599_v55, 0 }
 0x2c3   : > { %1159 = vmatmul.msk.bf16.vlgmr.msrb.gmra.mxu1 %vm582_vm1, %v794_v39 }
 0x2c8   : > { %v753_v40 = vpop.f32.mrf.mxu1 }
 0x2cd   : > { %v770_v41 = vpop.f32.mrf.mxu2 }
 0x2ce   : > { %v795_v42 = vpack.c.bf16 %v770_v41, %v770_v41 }
 0x2d0   : > { %1160 = vmatmul.msk.bf16.vlgmr.msrb.gmra.mxu2 %vm582_vm1, %v795_v42 }
 0x2d5   : > { %v772_v43 = vpop.f32.mrf.mxu2  ;;  %v789_v44 = vpop.f32.mrf.mxu3 }
 0x2d6   : > { %v796_v45 = vpack.c.bf16 %v789_v44, %v789_v44  ;;  %v960_v43 = vperm.slane %v1599_v55, 2 }
 0x2d8   : > { %1161 = vmatmul.msk.bf16.vlgmr.msrb.gmra.mxu3 %vm582_vm1, %v796_v45 }
 0x2dd   : > { %v791_v46 = vpop.f32.mrf.mxu3 }
 0x338   : > { %v812_v47 = vpop.f32.mrf.mxu0 }
 0x339   : > { %v873_v53 = vsel %vm377_vm0, %v812_v47, 0.0 }
 0x340   : > { %v814_v48 = vpop.f32.mrf.mxu0  ;;  %v831_v49 = vpop.f32.mrf.mxu1 }
 0x341   : > { %v874_v52 = vsel %vm377_vm0, %v831_v49, 0.0 }
 0x342   : > { %v875_v56 = vadd.f32 %v874_v52, %v873_v53 }
 0x348   : > { %v833_v50 = vpop.f32.mrf.mxu1 }
 0x353   : > { %v850_v51 = vpop.f32.mrf.mxu2 }
 0x354   : > { %v876_v54 = vsel %vm377_vm0, %v850_v51, 0.0 }
 0x355   : > { %v877_v57 = vadd.f32 %v876_v54, %v875_v56 }
 0x35b   : > { %v852_v58 = vpop.f32.mrf.mxu2  ;;  %v869_v59 = vpop.f32.mrf.mxu3 }
 0x35c   : > { %v878_v61 = vsel %vm377_vm0, %v869_v59, 0.0 }
 0x35d   : > { %v879_v62 = vadd.f32 %v878_v61, %v877_v57 }
 0x35f   : > { %v881_v63 = vadd.f32 %v880_v60, %v879_v62 }
 0x361   : > { %v882_v0 = vadd.f32 %v881_v63, %v1497_v8  ;;  %v1193_v8 = vld [vmem:[%s1670_s4 + $0x8] sm:$0xff] }
 0x362   : > { %943 = vmatpush.bf16.msra.mxu0 %v1193_v8 }
 0x363   : > { %v871_v1 = vpop.f32.mrf.mxu3  ;;  %v883_v2 = vsel %vm377_vm0, %v882_v0, 0.0 }
 0x364   : > { %884 = vadd.xlane.f32.xlu2 %v883_v2 }
 0x366   : > { %944 = vmatpush.bf16.msra.mxu0 %v1192_v16 }
 0x3d7   : > { %v885_v11 = vpop.xlane.xlu2 %884 }
 0x3d8   : > { %v893_v12 = vmul.f32 %v892_v10, %v885_v11 }
 0x3da   : > { %v894_v13 = vsub.f32 %v882_v0, %v893_v12  ;;  %v1025_v0 = vperm.slane %v1599_v55, 5 }
 0x3dc   : > { %v895_v14 = vmul.f32 %v894_v13, %v894_v13 }
 0x3de   : > { %v896_v15 = vsel %vm377_vm0, %v895_v14, 0.0 }
 0x3df   : > { %897 = vadd.xlane.f32.xlu0 %v896_v15 }
 0x452   : > { %v898_v18 = vpop.xlane.xlu0 %897 }
 0x453   : > { %v899_v19 = vmul.f32 %v898_v18, %v892_v10 }
 0x455   : > { %v900_v21 = vadd.f32 1e-05, %v899_v19 }
 0x457   : > { %1281 = vrsqrt.f32 %v900_v21  ;;  %vm907_vm5 = vweird.f32 %v900_v21 }
 0x45d   : > { %v1282_v22 = vpop.eup %1281 }
 0x45e   : > { %v902_v23 = vmul.f32 %v1282_v22, %v900_v21  ;;  %vm908_vm4 = vweird.f32 %v1282_v22 }
 0x45f   : > { %vm909_vm6 = vmor %vm907_vm5, %vm908_vm4 }
 0x460   : > { %v903_v24 = vmul.f32 %v1282_v22, %v902_v23 }
 0x462   : > { %v904_v25 = vmul.f32 0.5, %v903_v24 }
 0x464   : > { %v905_v26 = vsub.f32 1.5, %v904_v25 }
 0x466   : > { %v906_v27 = vmul.f32 %v1282_v22, %v905_v26 }
 0x468   : > { %v910_v29 = vsel %vm909_vm6, %v1282_v22, %v906_v27 }
 0x469   : > { %v911_v31 = vmul.f32 %v910_v29, %v894_v13 }
 0x46b   : > { %v913_v32 = vmul.f32 %v912_v28, %v911_v31 }
 0x46d   : > { %v915_v33 = vadd.f32 %v914_v30, %v913_v32 }
 0x46f   : > { %v916_v34 = vpack.c.bf16 %v915_v33, %v915_v33 }
 0x471   : > { %1170 = vmatmul.msk.bf16.vlgmr.msra.gmra.mxu0 %vm377_vm0, %v916_v34 }
 0x4ee   : > { %v946_v38 = vpop.f32.mrf.mxu0 }
 0x4ef   : > { %v947_v39 = vadd.f32 %v946_v38, %v921_v37 }
 0x4f1   : > { %v950_v40 = vmax.f32 %v947_v39, 0.0 }
 0x4f3   : > { %v951_v41 = vpack.c.bf16 %v950_v40, %v950_v40 }
 0x4f5   : > { %1187 = vmatmul.msk.bf16.vlgmr.msra.gmra.mxu1 %vm985_vm7, %v951_v41 }
 0x4f6   : > { %v948_v42 = vpop.f32.mrf.mxu0 }
 0x572   : > { %v998_v44 = vpop.f32.mrf.mxu1 }
 0x573   : > { %v999_v45 = vadd.f32 %v998_v44, %v960_v43 }
 0x575   : > { %v1002_v46 = vadd.f32 %v999_v45, %v915_v33 }
 0x577   : > { %v1003_v47 = vsel %vm377_vm0, %v1002_v46, 0.0 }
 0x578   : > { %1004 = vadd.xlane.f32.xlu1 %v1003_v47 }
 0x57a   : > { %v1000_v48 = vpop.f32.mrf.mxu1 }
 0x5eb   : > { %v1005_v49 = vpop.xlane.xlu1 %1004 }
 0x5ec   : > { %v1006_v50 = vmul.f32 %v1005_v49, %v892_v10 }
 0x5ee   : > { %v1007_v51 = vsub.f32 %v1002_v46, %v1006_v50 }
 0x5f0   : > { %v1008_v52 = vmul.f32 %v1007_v51, %v1007_v51 }
 0x5f2   : > { %v1009_v53 = vsel %vm377_vm0, %v1008_v52, 0.0 }
 0x5f3   : > { %1010 = vadd.xlane.f32.xlu2 %v1009_v53 }
 0x666   : > { %v1011_v54 = vpop.xlane.xlu2 %1010 }
 0x667   : > { %v1012_v56 = vmul.f32 %v1011_v54, %v892_v10 }
 0x669   : > { %v1013_v57 = vadd.f32 1e-05, %v1012_v56 }
 0x66b   : > { %1283 = vrsqrt.f32 %v1013_v57  ;;  %vm1020_vm9 = vweird.f32 %v1013_v57 }
 0x671   : > { %v1284_v58 = vpop.eup %1283 }
 0x672   : > { %v1015_v59 = vmul.f32 %v1284_v58, %v1013_v57  ;;  %vm1021_vm8 = vweird.f32 %v1284_v58 }
 0x673   : > { %vm1022_vm10 = vmor %vm1020_vm9, %vm1021_vm8 }
 0x674   : > { %v1016_v60 = vmul.f32 %v1284_v58, %v1015_v59 }
 0x676   : > { %v1017_v61 = vmul.f32 0.5, %v1016_v60 }
 0x678   : > { %v1018_v62 = vsub.f32 1.5, %v1017_v61 }
 0x67a   : > { %v1019_v63 = vmul.f32 %v1284_v58, %v1018_v62 }
 0x67c   : > { %v1023_v1 = vsel %vm1022_vm10, %v1284_v58, %v1019_v63 }
 0x67d   : > { %v1024_v2 = vmul.f32 %v1023_v1, %v1007_v51 }
 0x67f   : > { %v1026_v4 = vmul.f32 %v1025_v0, %v1024_v2 }
 0x681   : > { %v1028_v5 = vadd.f32 %v1027_v3, %v1026_v4 }
 0x683   : > { %1029 = vst.msk [vmem:[%s299_s18] sm:$0xff] %vm377_vm0, %v1028_v5 }
 0x684   : > { %1342 = shalt.err (!%p1339_p8)
}
 0x685   : > { %1202 = dma.vmem_to_hbm [thread:$0]  (%p1465_p5), %s1044_s19, 128, %s1046_s21, %s1031_s28  }
 0x686 PF: > { %p1214_p9 = scmp.ge.s32.totalorder %s1381_s27, 2  ;;  %s1057_s20 = sand.u32 1, %s1369_s24  }
 0x687   : > { %s1058_s15 = scalar_lea.sflag [#allocation4], %s1057_s20 }
 0x688   : > { %p1209_p10 = pnand %p1214_p9, %p1469_p6 }
 0x68a   : > { %p1210_p11 = pneg %p1209_p10 }
 0x68c   : > { %1364 = dma.done.wait (%p1210_p11), %s1058_s15, 128  }
 0x68d   : > { %1366 = vsyncadd (%p1210_p11), %s1058_s15, 4294967168  ;;  %p18_p12 = scmp.ge.s32.totalorder %s1452_s30, 4   ;;  %s1676_s24 = smov %s1373_s25 }
 0x68e   : > { %s1677_s25 = smov %s1377_s26  ;;  %s1678_s26 = smov %s1463_s10 }
 0x68f   : > { %s1679_s27 = smov %s1452_s30  ;;  %20 = sbr.rel (!%p18_p12) target bundleno = 4 (0x4), region = 91 }
 0x694   :  { %1064 = vsyncpa [#allocation3], 1 }
 0x695   :  { %1066 = vsyncpa [#allocation3 + $0x1], 1 }
 0x696   :  { %1067 = vsyncpa [#allocation4], 1 }
 0x697   :  { %1069 = vsyncpa [#allocation4 + $0x1], 1 }

</bundles_post_ra>
